<compile_context>
chip_gen: v7x
topology: tpu7x:2x2x1
jax: 0.10.0
libtpu: 0.0.40
codegen_flags: <defaults>
</compile_context>

<pallas_src>
import jax
import jax.numpy as jnp
from jax.experimental import pallas as pl
from jax.experimental.pallas import tpu as pltpu


def _round_up(x, m):
    return ((x + m - 1) // m) * m


def mf_kernel(dot_ref, bias_ref, o_ref):
    # dot_ref : [1, TN]   dot[j] for this column tile (lane-dense row)
    # bias_ref: [TM, 1]   user_bias[i] + item_bias[i] for this row tile
    # o_ref   : [TM, TN]  lane-dense output tile
    # out[i, j] = sigmoid(dot[j] + bias[i]) -- VPU broadcast-add, EUP sigmoid, unmasked vst.
    o_ref[...] = jax.nn.sigmoid(dot_ref[...] + bias_ref[...]).astype(o_ref.dtype)


def matrix_factorization_forward(user, item, user_factors, item_factors,
                                 user_bias, item_bias, *, tm=512, tn=1024,
                                 out_dtype=jnp.float32):
    """user, item: int32 [B]. Gathers + O(B*F) dot reduction are JAX glue; the O(B^2)
    broadcast-add + sigmoid + store runs in Pallas."""
    B = user.shape[0]

    uf = user_factors[user]          # [B, F]
    itf = item_factors[item]         # [B, F]
    dot = jnp.sum(uf * itf, axis=1)  # [B]      (matches torch .sum(1) exactly, f32 VPU)
    bias = user_bias[user] + item_bias[item]    # [B, 1]  fused bias (one DMA, one add)

    # Effective tile sizes: lane axis (output columns) multiple of 128, sublane axis
    # (output rows) multiple of 8. Defaults (512 x 1024 f32 = 2 MiB/tile) fit every
    # generation's VMEM with double-buffering headroom, including v7x's 64 MiB.
    tm_eff = min(tm, _round_up(B, 8))
    tn_eff = min(tn, _round_up(B, 128))
    bp_r = _round_up(B, tm_eff)          # padded output rows
    bp_c = _round_up(B, tn_eff)          # padded output columns

    # Padding via jnp.pad (fuses with the gathers); padded rows/cols sliced off below.
    dot_p = jnp.pad(dot, (0, bp_c - B)).reshape(1, bp_c)        # [1, bp_c]
    bias_p = jnp.pad(bias, ((0, bp_r - B), (0, 0)))             # [bp_r, 1]

    grid = (bp_r // tm_eff, bp_c // tn_eff)

    out_p = pl.pallas_call(
        mf_kernel,
        out_shape=jax.ShapeDtypeStruct((bp_r, bp_c), out_dtype),
        grid=grid,
        in_specs=[
            pl.BlockSpec((1, tn_eff), lambda i, j: (0, j)),    # dot row  (column tile)
            pl.BlockSpec((tm_eff, 1), lambda i, j: (i, 0)),    # fused bias (row tile)
        ],
        out_specs=pl.BlockSpec((tm_eff, tn_eff), lambda i, j: (i, j)),
        compiler_params=pltpu.CompilerParams(
            dimension_semantics=("parallel", "parallel"),
        ),
        cost_estimate=pl.CostEstimate(
            flops=bp_r * bp_c,                 # one broadcast add per output element
            transcendentals=bp_r * bp_c,       # one sigmoid per output element
            bytes_accessed=out_p_bytes(bp_r, bp_c, out_dtype) + 4 * (bp_c + bp_r),
        ),
    )(dot_p, bias_p)

    return out_p[:B, :B]


def out_p_bytes(bp_r, bp_c, dtype):
    return bp_r * bp_c * jnp.dtype(dtype).itemsize


def reference_forward(user, item, user_factors, item_factors, user_bias, item_bias):
    dot = jnp.sum(user_factors[user] * item_factors[item], axis=1)   # [B]
    add1 = dot[None, :] + user_bias[user] + item_bias[item]          # [B, B]
    return jax.nn.sigmoid(add1)


if __name__ == "__main__":
    # Small synthetic dataset sizes (stand-ins for Assistment09 user/item counts).
    n_users, n_items, n_factors = 50, 40, 20
    B = 8

    key = jax.random.PRNGKey(0)
    k_uf, k_if, k_ub, k_ib, k_u, k_i = jax.random.split(key, 6)

    # nn.Embedding default init: N(0, 1), float32.
    user_factors = jax.random.normal(k_uf, (n_users, n_factors), dtype=jnp.float32)
    item_factors = jax.random.normal(k_if, (n_items, n_factors), dtype=jnp.float32)
    user_bias = jax.random.normal(k_ub, (n_users, 1), dtype=jnp.float32)
    item_bias = jax.random.normal(k_ib, (n_items, 1), dtype=jnp.float32)

    user = jax.random.randint(k_u, (B,), 0, n_users, dtype=jnp.int32)
    item = jax.random.randint(k_i, (B,), 0, n_items, dtype=jnp.int32)

    out = matrix_factorization_forward(
        user, item, user_factors, item_factors, user_bias, item_bias)
    out = jax.block_until_ready(out)
    ref = reference_forward(
        user, item, user_factors, item_factors, user_bias, item_bias)
    assert out.shape == (B, B) and out.dtype == jnp.float32
    assert jnp.allclose(out, ref, atol=1e-5, rtol=1e-5)

    # Secondary check: multi-tile grid with row/column padding exercised.
    B2 = 600
    k_u2, k_i2 = jax.random.split(jax.random.PRNGKey(1), 2)
    user2 = jax.random.randint(k_u2, (B2,), 0, n_users, dtype=jnp.int32)
    item2 = jax.random.randint(k_i2, (B2,), 0, n_items, dtype=jnp.int32)
    out2 = matrix_factorization_forward(
        user2, item2, user_factors, item_factors, user_bias, item_bias,
        tm=128, tn=256)
    out2 = jax.block_until_ready(out2)
    ref2 = reference_forward(
        user2, item2, user_factors, item_factors, user_bias, item_bias)
    assert out2.shape == (B2, B2)
    assert jnp.allclose(out2, ref2, atol=1e-5, rtol=1e-5)

    print("KERNEL_OK")
</pallas_src>

<mosaic_0001>
module attributes {stable_mosaic.version = 11 : i64} {
  func.func @mf_kernel(%arg0: i32, %arg1: i32, %arg2: memref<1x128xf32, #tpu.memory_space<vmem>>, %arg3: memref<8x1xf32, #tpu.memory_space<vmem>>, %arg4: memref<8x128xf32, #tpu.memory_space<vmem>>) attributes {dimension_semantics = [#tpu.dimension_semantics<parallel>, #tpu.dimension_semantics<parallel>], iteration_bounds = array<i64: 1, 1>, scalar_prefetch = 0 : i64, scratch_operands = 0 : i64, tpu.core_type = #tpu.core_type<tc>, window_params = [{transform_indices = @transform_0, window_bounds = array<i64: 1, 128>}, {transform_indices = @transform_1, window_bounds = array<i64: 8, 1>}, {transform_indices = @transform_2, window_bounds = array<i64: 8, 128>}]} {
    %c0 = arith.constant 0 : index
    %c0_0 = arith.constant 0 : index
    %0 = vector.load %arg2[%c0, %c0_0] : memref<1x128xf32, #tpu.memory_space<vmem>>, vector<1x128xf32>
    %c0_1 = arith.constant 0 : index
    %c0_2 = arith.constant 0 : index
    %1 = vector.load %arg3[%c0_1, %c0_2] : memref<8x1xf32, #tpu.memory_space<vmem>>, vector<8x1xf32>
    %2 = vector.broadcast %0 : vector<1x128xf32> to vector<8x128xf32>
    %3 = vector.broadcast %1 : vector<8x1xf32> to vector<8x128xf32>
    %4 = arith.addf %2, %3 : vector<8x128xf32>
    %5 = arith.negf %4 : vector<8x128xf32>
    %6 = math.exp %5 : vector<8x128xf32>
    %cst = arith.constant 1.000000e+00 : f32
    %7 = vector.broadcast %cst : f32 to vector<8x128xf32>
    %8 = arith.addf %7, %6 : vector<8x128xf32>
    %9 = arith.divf %7, %8 : vector<8x128xf32>
    %c0_3 = arith.constant 0 : index
    %c0_4 = arith.constant 0 : index
    %10 = vector.load %arg4[%c0_3, %c0_4] : memref<8x128xf32, #tpu.memory_space<vmem>>, vector<8x128xf32>
    tpu.vector_store %arg4[%c0_3, %c0_4], %9 {strides = array<i32>} : memref<8x128xf32, #tpu.memory_space<vmem>>, vector<8x128xf32>,
    return
  }
  func.func @transform_0(%arg0: i32, %arg1: i32) -> (i32, i32) {
    %c0_i32 = arith.constant 0 : i32
    %c0_i32_0 = arith.constant 0 : i32
    return %c0_i32, %arg1 : i32, i32
  }
  func.func @transform_1(%arg0: i32, %arg1: i32) -> (i32, i32) {
    %c0_i32 = arith.constant 0 : i32
    %c0_i32_0 = arith.constant 0 : i32
    return %arg0, %c0_i32 : i32, i32
  }
  func.func @transform_2(%arg0: i32, %arg1: i32) -> (i32, i32) {
    %c0_i32 = arith.constant 0 : i32
    return %arg0, %arg1 : i32, i32
  }
}

</mosaic_0001>

<bundles_post_ra>
// kernel: tpu_custom_call.1
= control target key start
LH: loop header
LB: loop body
LE: loop exit
PB: predicated region body
PF: predicated region fallthrough
CT: control target
= control target key end

     0   :  { %s115_s0 = inlined_call_operand.vmem [shape: f32[1,128], index: 0, kind: input, shape index: {}]   ;;  %s116_s1 = inlined_call_operand.vmem [shape: f32[8,1], index: 1, kind: input, shape index: {}]   ;;  %s117_s2 = inlined_call_operand.hbm [shape: f32[8,128], index: 2, kind: output, shape index: {}]  }
   0x1   :  { %v13_v0 = vld [vmem:[%s116_s1] sm:$0xff] }
   0x2   :  { %7 = vsyncpa [#allocation3], 0  ;;  %v80_v1 = vmov 0   ;;  %v47_v2 = vld [vmem:[%s115_s0] ss:$0 sm:$0xff]  ;;  %s81_s13 = smov [#allocation2]  }
   0x3   :  { %51 = vset.pattern.permute.xlu0 %v80_v1  ;;  %s39_s14 = sshll.u32 %s81_s13, 4  ;;  %s40_s14 = int_to_ptr.vmem [resolvable:$true] %s39_s14 }
   0x4   :  { %22 = vperm.xlu0 %51, %v13_v0   ;;  %s56_s1 = scalar_lea.vmem %s40_s14, 128  ;;  %p61_p1 = scmp.lt.s32.totalorder %s40_s14, %s40_s14 }
   0x5   :  { %p57_p0 = scmp.ne.s32.totalorder %s40_s14, %s56_s1  ;;  %p62_p2 = scmp.lt.s32.totalorder %s56_s1, %s56_s1 }
   0x7   :  { %p63_p3 = por %p62_p2, %p61_p1 }
   0x9   :  { %p64_p4 = pnand %p63_p3, %p57_p0 }
  0x83   :  { %v23_v3 = vpop.permute.xlu0 %22 }
  0x84   :  { %v25_v4 = vadd.f32 %v47_v2, %v23_v3 }
  0x86   :  { %v48_v5 = vmul.f32 -1.442695, %v25_v4 }
  0x88   :  { %52 = vpow2.f32 %v48_v5 }
  0x92   :  { %v53_v6 = vpop.eup %52 }
  0x93   :  { %v29_v7 = vadd.f32 1.0, %v53_v6 }
  0x95   :  { %54 = vrcp.f32 %v29_v7 }
  0x9f   :  { %v55_v8 = vpop.eup %54 }
  0xa0   :  { %32 = vst [vmem:[#allocation2] sm:$0xff] %v55_v8 }
  0xa1   :  { %67 = shalt.err (!%p64_p4)
}
  0xa2   :  { %s68_s16 = scalar_lea.hbm %s117_s2, 128 }
  0xa3   :  { %p69_p5 = scmp.ne.s32.totalorder %s117_s2, %s68_s16  ;;  %p72_p6 = scmp.lt.u32.totalorder %s68_s16, %s117_s2 }
  0xa5   :  { %p74_p7 = pnand %p72_p6, %p69_p5 }
  0xa7   :  { %77 = shalt.err (!%p74_p7)
}
  0xa8   :  { %42 = dma.vmem_to_hbm [thread:$0]  %s40_s14, 128, %s117_s2, [#allocation3]  }
  0xa9   :  { %78 = dma.done.wait [#allocation3], 128  }
  0xaa   :  { %79 = vsyncadd [#allocation3], 4294967168 }
  0xab   :  { %46 = vsyncpa [#allocation3], 1 }

</bundles_post_ra>
